<compile_context>
chip_gen: v7x
topology: tpu7x:2x2x1
jax: 0.10.0
libtpu: 0.0.40
codegen_flags: <defaults>
</compile_context>

<pallas_src>
import math
import functools

import jax
import jax.numpy as jnp
from jax.experimental import pallas as pl
from jax.experimental.pallas import tpu as pltpu


def _round_up(x: int, m: int = 128) -> int:
    return ((x + m - 1) // m) * m


def time_embedding_kernel(t_ref, side_ref, w1_ref, w2_ref, o_ref,
                          *, half, C, off_b1, off_b2):
    """Fused: sinusoidal embedding + lin1 + Swish + lin2.

    t_ref    : (B, 1)            f32   timesteps
    side_ref : (1, total_pad)    f32   [freq | pad | b1 | pad | b2 | pad]
    w1_ref   : (C, 2C)           bf16  W1^T (rows 0:half multiply sin, half: cos)
    w2_ref   : (2C, C)           bf16  W2^T
    o_ref    : (B, C)            f32
    """
    t = t_ref[...]                                    # (B, 1) f32

    # Static, lane-aligned slices of the coalesced side-input array.
    freq = side_ref[:, 0:half]                        # (1, C/2)
    b1 = side_ref[:, off_b1:off_b1 + 2 * C]           # (1, 2C)
    b2 = side_ref[:, off_b2:off_b2 + C]               # (1, C)

    emb = t * freq                                    # (B, C/2) f32

    # First layer without concatenating [sin, cos] along the lane axis:
    #   emb_full @ W1^T == sin(emb) @ W1^T[:C/2] + cos(emb) @ W1^T[C/2:]
    # W1 row halves are static ref slices (no extra DMA, no relayout).
    sin_e = jnp.sin(emb).astype(jnp.bfloat16)
    cos_e = jnp.cos(emb).astype(jnp.bfloat16)
    h = jnp.dot(sin_e, w1_ref[:half, :], preferred_element_type=jnp.float32)
    h = h + jnp.dot(cos_e, w1_ref[half:, :], preferred_element_type=jnp.float32)
    h = h + b1                                        # (B, 2C) f32

    # Swish (x * sigmoid(x)) in f32; exact division (inf-safe: exp(-h)->inf => 0).
    h = h * (1.0 / (1.0 + jnp.exp(-h)))

    out = jnp.dot(h.astype(jnp.bfloat16), w2_ref[...],
                  preferred_element_type=jnp.float32)
    out = out + b2                                    # (B, C) f32
    o_ref[...] = out.astype(o_ref.dtype)


def time_embedding(t, w1_t, b1, w2_t, b2, *, n_channels: int):
    """t: (B,) f32. w1_t: (C, 2C), b1: (2C,), w2_t: (2C, C), b2: (C,).

    Weights are the transposed PyTorch Linear weights (in_features, out_features).
    """
    assert n_channels % 2 == 0 and n_channels >= 4, "even n_channels >= 4 required"
    B = t.shape[0]
    C = n_channels
    half = C // 2

    # Wrapper-side precomputation (layout plumbing, done once per call).
    t2d = t.reshape(B, 1).astype(jnp.float32)
    scale = math.log(10000.0) / (half - 1)
    freq = jnp.exp(jnp.arange(half, dtype=jnp.float32) * -scale)

    # Coalesce the three tiny f32 side inputs into one array; each segment starts
    # on a 128-lane boundary so the in-kernel static slices stay lane-aligned.
    off_b1 = _round_up(half)
    off_b2 = off_b1 + _round_up(2 * C)
    total = off_b2 + _round_up(C)
    side = jnp.zeros((1, total), jnp.float32)
    side = side.at[0, 0:half].set(freq)
    side = side.at[0, off_b1:off_b1 + 2 * C].set(b1.astype(jnp.float32))
    side = side.at[0, off_b2:off_b2 + C].set(b2.astype(jnp.float32))

    w1_bf = w1_t.astype(jnp.bfloat16)                 # (C, 2C)
    w2_bf = w2_t.astype(jnp.bfloat16)                 # (2C, C)

    kernel = functools.partial(time_embedding_kernel,
                               half=half, C=C, off_b1=off_b1, off_b2=off_b2)

    full = lambda shape: pl.BlockSpec(shape, lambda: tuple(0 for _ in shape))

    return pl.pallas_call(
        kernel,
        out_shape=jax.ShapeDtypeStruct((B, C), jnp.float32),
        grid=(),
        in_specs=[
            full((B, 1)),          # t
            full((1, total)),      # coalesced freq/b1/b2
            full((C, 2 * C)),      # W1^T (bf16)
            full((2 * C, C)),      # W2^T (bf16)
        ],
        out_specs=full((B, C)),
        compiler_params=pltpu.CompilerParams(vmem_limit_bytes=4 << 20),
    )(t2d, side, w1_bf, w2_bf)


def reference(t, w1_t, b1, w2_t, b2, n_channels):
    """Pure-JAX f32 reference matching the PyTorch module forward."""
    half_dim = n_channels // 2
    scale = math.log(10000.0) / (half_dim - 1)
    freq = jnp.exp(jnp.arange(half_dim, dtype=jnp.float32) * -scale)
    emb = t[:, None] * freq[None, :]
    emb = jnp.concatenate([jnp.sin(emb), jnp.cos(emb)], axis=1)
    h = emb @ w1_t + b1[None, :]
    h = h * jax.nn.sigmoid(h)
    return h @ w2_t + b2[None, :]


if __name__ == "__main__":
    C = 256          # n_channels (module default)
    B = 8            # small batch of timesteps

    key = jax.random.PRNGKey(0)
    k_t, k_w1, k_b1, k_w2, k_b2 = jax.random.split(key, 5)

    # PyTorch Linear parameter shapes: W1 (2C, C), W2 (C, 2C)
    bound1 = 1.0 / math.sqrt(C)
    bound2 = 1.0 / math.sqrt(2 * C)
    w1 = jax.random.uniform(k_w1, (2 * C, C), jnp.float32, -bound1, bound1)
    b1 = jax.random.uniform(k_b1, (2 * C,), jnp.float32, -bound1, bound1)
    w2 = jax.random.uniform(k_w2, (C, 2 * C), jnp.float32, -bound2, bound2)
    b2 = jax.random.uniform(k_b2, (C,), jnp.float32, -bound2, bound2)

    # Kernel consumes transposed weights (in_features, out_features).
    w1_t = w1.T   # (C, 2C)
    w2_t = w2.T   # (2C, C)

    t = jax.random.uniform(k_t, (B,), jnp.float32, 0.0, 1000.0)

    out = time_embedding(t, w1_t, b1, w2_t, b2, n_channels=C)
    out = jax.block_until_ready(out)

    ref = reference(t, w1_t, b1, w2_t, b2, C)
    assert out.shape == (B, C)
    # bf16 weights / matmul LHS (f32 accumulation) -> looser tolerance vs f32 ref.
    assert jnp.allclose(out, ref, atol=2e-2, rtol=2e-2), "mismatch vs reference"

    print("KERNEL_OK")
</pallas_src>

<mosaic_0001>
module attributes {stable_mosaic.version = 11 : i64} {
  func.func @time_embedding_kernel(%arg0: memref<8x1xf32, #tpu.memory_space<vmem>>, %arg1: memref<1x896xf32, #tpu.memory_space<vmem>>, %arg2: memref<256x512xbf16, #tpu.memory_space<vmem>>, %arg3: memref<512x256xbf16, #tpu.memory_space<vmem>>, %arg4: memref<8x256xf32, #tpu.memory_space<vmem>>) attributes {dimension_semantics = [], scalar_prefetch = 0 : i64, scratch_operands = 0 : i64, tpu.core_type = #tpu.core_type<tc>} {
    %c0 = arith.constant 0 : index
    %c0_0 = arith.constant 0 : index
    %0 = vector.load %arg0[%c0, %c0_0] : memref<8x1xf32, #tpu.memory_space<vmem>>, vector<8x1xf32>
    %c0_1 = arith.constant 0 : index
    %c0_2 = arith.constant 0 : index
    %1 = vector.load %arg1[%c0_1, %c0_2] : memref<1x896xf32, #tpu.memory_space<vmem>>, vector<1x128xf32>
    %c0_3 = arith.constant 0 : index
    %c128 = arith.constant 128 : index
    %2 = vector.load %arg1[%c0_3, %c128] : memref<1x896xf32, #tpu.memory_space<vmem>>, vector<1x512xf32>
    %c0_4 = arith.constant 0 : index
    %c640 = arith.constant 640 : index
    %3 = vector.load %arg1[%c0_4, %c640] : memref<1x896xf32, #tpu.memory_space<vmem>>, vector<1x256xf32>
    %4 = vector.broadcast %0 : vector<8x1xf32> to vector<8x128xf32>
    %5 = vector.broadcast %1 : vector<1x128xf32> to vector<8x128xf32>
    %6 = arith.mulf %4, %5 : vector<8x128xf32>
    %7 = math.sin %6 : vector<8x128xf32>
    %8 = arith.truncf %7 : vector<8x128xf32> to vector<8x128xbf16>
    %9 = math.cos %6 : vector<8x128xf32>
    %10 = arith.truncf %9 : vector<8x128xf32> to vector<8x128xbf16>
    %c0_5 = arith.constant 0 : index
    %c0_6 = arith.constant 0 : index
    %11 = vector.load %arg2[%c0_5, %c0_6] : memref<256x512xbf16, #tpu.memory_space<vmem>>, vector<128x512xbf16>
    %cst = arith.constant dense<0.000000e+00> : vector<8x512xf32>
    %12 = tpu.matmul %8, %11, %cst {dimension_numbers = #tpu.dot_dimension_numbers<[1], [0], [0], [1], [0, 0, 1, 1], [], []>} : vector<8x128xbf16>, vector<128x512xbf16>, vector<8x512xf32> -> vector<8x512xf32>
    %c128_7 = arith.constant 128 : index
    %c0_8 = arith.constant 0 : index
    %13 = vector.load %arg2[%c128_7, %c0_8] : memref<256x512xbf16, #tpu.memory_space<vmem>>, vector<128x512xbf16>
    %cst_9 = arith.constant dense<0.000000e+00> : vector<8x512xf32>
    %14 = tpu.matmul %10, %13, %cst_9 {dimension_numbers = #tpu.dot_dimension_numbers<[1], [0], [0], [1], [0, 0, 1, 1], [], []>} : vector<8x128xbf16>, vector<128x512xbf16>, vector<8x512xf32> -> vector<8x512xf32>
    %15 = arith.addf %12, %14 : vector<8x512xf32>
    %16 = vector.broadcast %2 : vector<1x512xf32> to vector<8x512xf32>
    %17 = arith.addf %15, %16 : vector<8x512xf32>
    %cst_10 = arith.constant 0.000000e+00 : f32
    %18 = vector.broadcast %cst_10 : f32 to vector<8x512xf32>
    %19 = arith.subf %18, %17 : vector<8x512xf32>
    %20 = math.exp %19 : vector<8x512xf32>
    %cst_11 = arith.constant 1.000000e+00 : f32
    %21 = vector.broadcast %cst_11 : f32 to vector<8x512xf32>
    %22 = arith.addf %21, %20 : vector<8x512xf32>
    %cst_12 = arith.constant 1.000000e+00 : f32
    %23 = vector.broadcast %cst_12 : f32 to vector<8x512xf32>
    %24 = arith.divf %23, %22 : vector<8x512xf32>
    %25 = arith.mulf %17, %24 : vector<8x512xf32>
    %26 = arith.truncf %25 : vector<8x512xf32> to vector<8x512xbf16>
    %c0_13 = arith.constant 0 : index
    %c0_14 = arith.constant 0 : index
    %27 = vector.load %arg3[%c0_13, %c0_14] : memref<512x256xbf16, #tpu.memory_space<vmem>>, vector<512x256xbf16>
    %cst_15 = arith.constant dense<0.000000e+00> : vector<8x256xf32>
    %28 = tpu.matmul %26, %27, %cst_15 {dimension_numbers = #tpu.dot_dimension_numbers<[1], [0], [0], [1], [0, 0, 1, 1], [], []>} : vector<8x512xbf16>, vector<512x256xbf16>, vector<8x256xf32> -> vector<8x256xf32>
    %29 = vector.broadcast %3 : vector<1x256xf32> to vector<8x256xf32>
    %30 = arith.addf %28, %29 : vector<8x256xf32>
    %c0_16 = arith.constant 0 : index
    %c0_17 = arith.constant 0 : index
    %31 = vector.load %arg4[%c0_16, %c0_17] : memref<8x256xf32, #tpu.memory_space<vmem>>, vector<8x256xf32>
    tpu.vector_store %arg4[%c0_16, %c0_17], %30 {strides = array<i32>} : memref<8x256xf32, #tpu.memory_space<vmem>>, vector<8x256xf32>,
    return
  }
}

</mosaic_0001>

<bundles_post_ra>
// kernel: tpu_custom_call.1
= control target key start
LH: loop header
LB: loop body
LE: loop exit
PB: predicated region body
PF: predicated region fallthrough
CT: control target
= control target key end

     0   :  { %9 = vsyncpa [#allocation3], 0  ;;  %s1965_s0 = inlined_call_operand.vmem [shape: f32[8,1], index: 0, kind: input, shape index: {}]   ;;  %s1966_s1 = inlined_call_operand.vmem [shape: f32[1,896], index: 1, kind: input, shape index: {}]   ;;  %s1967_s2 = inlined_call_operand.hbm [shape: bf16[256,512], index: 2, kind: input, shape index: {}]   ;;  %s1968_s3 = inlined_call_operand.hbm [shape: bf16[512,256], index: 3, kind: input, shape index: {}]   ;;  %s1969_s4 = inlined_call_operand.hbm [shape: f32[8,256], index: 4, kind: output, shape index: {}]  }
   0x1   :  { %10 = vsyncpa [#allocation6], 0 }
   0x2   :  { %11 = vsyncpa [#allocation4], 0  ;;  %s1816_s15 = smov [#allocation2]   ;;  %s1744_s19 = scalar_lea.hbm %s1967_s2, 8192 }
   0x3   :  { %s21_s16 = sshll.u32 %s1816_s15, 4  ;;  %p1745_p0 = scmp.ne.s32.totalorder %s1967_s2, %s1744_s19  ;;  %s22_s16 = int_to_ptr.vmem [resolvable:$true] %s21_s16 }
   0x4   :  { %p1748_p1 = scmp.lt.u32.totalorder %s1744_s19, %s1967_s2 }
   0x6   :  { %p1750_p2 = pnand %p1748_p1, %p1745_p0 }
   0x8   :  { %1753 = shalt.err (!%p1750_p2)
}
   0x9   :  { %s1754_s24 = scalar_lea.vmem %s22_s16, 8192  ;;  %p1759_p4 = scmp.lt.s32.totalorder %s22_s16, %s22_s16 }
   0xa   :  { %p1755_p3 = scmp.ne.s32.totalorder %s22_s16, %s1754_s24  ;;  %p1760_p5 = scmp.lt.s32.totalorder %s1754_s24, %s1754_s24 }
   0xc   :  { %p1761_p6 = por %p1760_p5, %p1759_p4 }
   0xe   :  { %p1762_p7 = pnand %p1761_p6, %p1755_p3 }
  0x10   :  { %1765 = shalt.err (!%p1762_p7)
}
  0x11   :  { %s1817_s25 = smov 256   ;;  %s1818_s26 = smov 16  }
  0x12   :  { %27 = dma.hbm_to_vmem [thread:$0]  %s1967_s2, 8192, %s22_s16, [#allocation3], %s1817_s25, %s1817_s25, %s1818_s26  }
  0x13   :  { %s1819_s29 = smov [#allocation5]   ;;  %s1766_s7 = scalar_lea.hbm %s1968_s3, 8192 }
  0x14   :  { %s33_s30 = sshll.u32 %s1819_s29, 4  ;;  %p1767_p8 = scmp.ne.s32.totalorder %s1968_s3, %s1766_s7  ;;  %s34_s30 = int_to_ptr.vmem [resolvable:$true] %s33_s30 }
  0x15   :  { %p1770_p9 = scmp.lt.u32.totalorder %s1766_s7, %s1968_s3 }
  0x17   :  { %p1772_p10 = pnand %p1770_p9, %p1767_p8 }
  0x19   :  { %1775 = shalt.err (!%p1772_p10)
}
  0x1a   :  { %s1776_s12 = scalar_lea.vmem %s34_s30, 8192  ;;  %p1781_p12 = scmp.lt.s32.totalorder %s34_s30, %s34_s30 }
  0x1b   :  { %p1777_p11 = scmp.ne.s32.totalorder %s34_s30, %s1776_s12  ;;  %p1782_p13 = scmp.lt.s32.totalorder %s1776_s12, %s1776_s12 }
  0x1d   :  { %p1783_p0 = por %p1782_p13, %p1781_p12 }
  0x1f   :  { %p1784_p1 = pnand %p1783_p0, %p1777_p11 }
  0x21   :  { %1787 = shalt.err (!%p1784_p1)
}
  0x22   :  { %s1820_s2 = smov 128   ;;  %s1821_s13 = smov 8  }
  0x23   :  { %39 = dma.hbm_to_vmem [thread:$0]  %s1968_s3, 8192, %s34_s30, [#allocation6], %s1820_s2, %s1820_s2, %s1821_s13  }
  0x24   :  { %1810 = dma.done.wait [#allocation3], 8192  }
  0x25   :  { %1811 = vsyncadd [#allocation3], 4294959104 }
  0x26   :  { %1812 = dma.done.wait [#allocation6], 8192  }
  0x27   :  { %1813 = vsyncadd [#allocation6], 4294959104  ;;  %v1822_v0 = vmov 0   ;;  %v47_v1 = vld [vmem:[%s1965_s0] sm:$0xff]  ;;  %v1534_v3 = vld [vmem:[#allocation2 + $0x10c] ss:$16 sps:$4 sm:$0xff]  }
  0x28   :  { %1531 = vset.pattern.permute.xlu0 %v1822_v0  ;;  %528 = vmatprep.mubr.bf16.mxu0 %v1822_v0  ;;  %v1532_v2 = vld [vmem:[#allocation2 + $0x104] ss:$16 sps:$4 sm:$0xff]   ;;  %v1536_v4 = vld [vmem:[#allocation2 + $0x100] ss:$16 sps:$4 sm:$0xff]   ;;  %v1537_v5 = vld [vmem:[#allocation2 + $0x108] ss:$16 sps:$4 sm:$0xff]  }
  0x29   :  { %569 = vmatprep.mubr.bf16.mxu1 %v1822_v0  ;;  %53 = vperm.xlu0 %1531, %v47_v1   ;;  %v1538_v6 = vld [vmem:[#allocation2 + $0x124] ss:$16 sps:$4 sm:$0xff]   ;;  %v1540_v7 = vld [vmem:[#allocation2 + $0x12c] ss:$16 sps:$4 sm:$0xff]   ;;  %v1542_v8 = vld [vmem:[#allocation2 + $0x120] ss:$16 sps:$4 sm:$0xff]  }
  0x2a   :  { %496 = vmatprep.subr.bf16.mxu0 %v1532_v2  ;;  %537 = vmatprep.subr.bf16.mxu1 %v1534_v3  ;;  %v1543_v9 = vld [vmem:[#allocation2 + $0x128] ss:$16 sps:$4 sm:$0xff]   ;;  %v1544_v10 = vld [vmem:[#allocation2 + $0x144] ss:$16 sps:$4 sm:$0xff]   ;;  %v1546_v11 = vld [vmem:[#allocation2 + $0x14c] ss:$16 sps:$4 sm:$0xff]  }
  0x2b   :  { %497 = vmatpush1.bf16.msra.mxu0 %v1536_v4  ;;  %538 = vmatpush1.bf16.msra.mxu1 %v1537_v5  ;;  %v1548_v12 = vld [vmem:[#allocation2 + $0x140] ss:$16 sps:$4 sm:$0xff]   ;;  %v1549_v13 = vld [vmem:[#allocation2 + $0x148] ss:$16 sps:$4 sm:$0xff]   ;;  %v1550_v14 = vld [vmem:[#allocation2 + $0x164] ss:$16 sps:$4 sm:$0xff]  }
  0x2c   :  { %498 = vmatprep.subr.bf16.mxu0 %v1538_v6  ;;  %539 = vmatprep.subr.bf16.mxu1 %v1540_v7  ;;  %v1552_v15 = vld [vmem:[#allocation2 + $0x16c] ss:$16 sps:$4 sm:$0xff]   ;;  %v1554_v16 = vld [vmem:[#allocation2 + $0x160] ss:$16 sps:$4 sm:$0xff]   ;;  %v1555_v17 = vld [vmem:[#allocation2 + $0x168] ss:$16 sps:$4 sm:$0xff]  }
  0x2d   :  { %v1556_v18 = vld [vmem:[#allocation2 + $0x184] ss:$16 sps:$4 sm:$0xff]   ;;  %v1558_v19 = vld [vmem:[#allocation2 + $0x18c] ss:$16 sps:$4 sm:$0xff]   ;;  %v1560_v20 = vld [vmem:[#allocation2 + $0x180] ss:$16 sps:$4 sm:$0xff]  }
  0x2e   :  { %v1561_v21 = vld [vmem:[#allocation2 + $0x188] ss:$16 sps:$4 sm:$0xff]   ;;  %v1562_v22 = vld [vmem:[#allocation2 + $0x1a4] ss:$16 sps:$4 sm:$0xff]   ;;  %v1564_v23 = vld [vmem:[#allocation2 + $0x1ac] ss:$16 sps:$4 sm:$0xff]  }
  0x2f   :  { %499 = vmatpush1.bf16.msra.mxu0 %v1542_v8  ;;  %540 = vmatpush1.bf16.msra.mxu1 %v1543_v9  ;;  %v1566_v24 = vld [vmem:[#allocation2 + $0x1a0] ss:$16 sps:$4 sm:$0xff]   ;;  %v1567_v25 = vld [vmem:[#allocation2 + $0x1a8] ss:$16 sps:$4 sm:$0xff]   ;;  %v1568_v26 = vld [vmem:[#allocation2 + $0x1c4] ss:$16 sps:$4 sm:$0xff]  }
  0x30   :  { %500 = vmatprep.subr.bf16.mxu0 %v1544_v10  ;;  %541 = vmatprep.subr.bf16.mxu1 %v1546_v11  ;;  %v1570_v27 = vld [vmem:[#allocation2 + $0x1cc] ss:$16 sps:$4 sm:$0xff]   ;;  %v1572_v28 = vld [vmem:[#allocation2 + $0x1c0] ss:$16 sps:$4 sm:$0xff]   ;;  %v1573_v29 = vld [vmem:[#allocation2 + $0x1c8] ss:$16 sps:$4 sm:$0xff]  }
  0x31   :  { %v1574_v30 = vld [vmem:[#allocation2 + $0x1e4] ss:$16 sps:$4 sm:$0xff]   ;;  %v1576_v31 = vld [vmem:[#allocation2 + $0x1ec] ss:$16 sps:$4 sm:$0xff]   ;;  %v1578_v32 = vld [vmem:[#allocation2 + $0x1e0] ss:$16 sps:$4 sm:$0xff]  }
  0x32   :  { %v1579_v33 = vld [vmem:[#allocation2 + $0x1e8] ss:$16 sps:$4 sm:$0xff]   ;;  %v1582_v34 = vld [vmem:[#allocation2 + $0x4] ss:$16 sps:$4 sm:$0xff]   ;;  %v1585_v35 = vld [vmem:[#allocation2 + $0xc] ss:$16 sps:$4 sm:$0xff]  }
  0x33   :  { %501 = vmatpush1.bf16.msra.mxu0 %v1548_v12  ;;  %542 = vmatpush1.bf16.msra.mxu1 %v1549_v13  ;;  %v1372_v36 = vld [vmem:[%s1966_s1] ss:$0 sm:$0xff]  ;;  %v1823_v49 = vmov 683565275   ;;  %v1824_v51 = vmov 2475754826  }
  0x34   :  { %502 = vmatprep.subr.bf16.mxu0 %v1550_v14  ;;  %543 = vmatprep.subr.bf16.mxu1 %v1552_v15  ;;  %v1825_v54 = vmov 2131351028   ;;  %v1826_v57 = vmov 2102212464   ;;  %v1827_v60 = vmov 920167782  }
  0x35   :  { %v1828_v63 = vmov 1326507024   ;;  %s1829_s22 = smov [#allocation7]  }
  0x36   :  { %s1362_s23 = sshll.u32 %s1829_s22, 4  ;;  %s1363_s23 = int_to_ptr.vmem [resolvable:$true] %s1362_s23 }
  0x37   :  { %503 = vmatpush1.bf16.msra.mxu0 %v1554_v16  ;;  %544 = vmatpush1.bf16.msra.mxu1 %v1555_v17  ;;  %p1793_p3 = scmp.lt.s32.totalorder %s1363_s23, %s1363_s23 }
  0x38   :  { %504 = vmatprep.subr.bf16.mxu0 %v1556_v18  ;;  %545 = vmatprep.subr.bf16.mxu1 %v1558_v19 }
  0x3b   :  { %505 = vmatpush1.bf16.msra.mxu0 %v1560_v20  ;;  %546 = vmatpush1.bf16.msra.mxu1 %v1561_v21 }
  0x3c   :  { %506 = vmatprep.subr.bf16.mxu0 %v1562_v22  ;;  %547 = vmatprep.subr.bf16.mxu1 %v1564_v23 }
  0x3f   :  { %507 = vmatpush1.bf16.msra.mxu0 %v1566_v24  ;;  %548 = vmatpush1.bf16.msra.mxu1 %v1567_v25 }
  0x40   :  { %508 = vmatprep.subr.bf16.mxu0 %v1568_v26  ;;  %549 = vmatprep.subr.bf16.mxu1 %v1570_v27 }
  0x43   :  { %509 = vmatpush1.bf16.msra.mxu0 %v1572_v28  ;;  %550 = vmatpush1.bf16.msra.mxu1 %v1573_v29 }
  0x44   :  { %510 = vmatprep.subr.bf16.mxu0 %v1574_v30  ;;  %551 = vmatprep.subr.bf16.mxu1 %v1576_v31 }
  0x47   :  { %511 = vmatpush1.bf16.msra.mxu0 %v1578_v32  ;;  %552 = vmatpush1.bf16.msra.mxu1 %v1579_v33 }
  0x48   :  { %738 = vmatprep.subr.bf16.mxu0 %v1582_v34  ;;  %779 = vmatprep.subr.bf16.mxu1 %v1585_v35 }
  0xa8   :  { %v54_v37 = vpop.permute.xlu0 %53 }
  0xa9   :  { %v1888_v38 = vmul.f32 %v1372_v36, %v54_v37 }
  0xab   :  { %v66_v39 = vand.u32 2139095040, %v1888_v38  ;;  %v63_v43 = vand.u32 2147483647, %v1888_v38  ;;  %vm65_vm7 = vcmp.lt.s32.totalorder %v1888_v38, 0  ;;  %vm155_vm12 = vweird.f32 %v1888_v38 }
  0xad   :  { %v67_v40 = vshrl.u32 %v66_v39, 23  ;;  %v70_v46 = vand.u32 8388607, %v63_v43  ;;  %vm64_vm8 = vcmp.le.f32.partialorder %v63_v43, 0.7853982 }
  0xaf   :  { %v1373_v41 = vadd.s32 4294967169, %v67_v40  ;;  %v71_v2 = vor.u32 8388608, %v70_v46 }
  0xb1   :  { %v73_v42 = vadd.s32 1, %v1373_v41  ;;  %v111_v16 = vshll.u32 %v71_v2, 8 }
  0xb3   :  { %vm74_vm0 = vcmp.gt.s32.totalorder %v73_v42, 0 }
  0xb4   :  { %v75_v44 = vsel %vm74_vm0, %v73_v42, 0 }
  0xb5   :  { %v77_v45 = vand.u32 31, %v75_v44  ;;  %v76_v48 = vshrl.u32 %v75_v44, 5 }
  0xb7   :  { %v78_v47 = vsub.s32 32, %v77_v45  ;;  %v80_v50 = vshll.u32 %v1823_v49, %v77_v45  ;;  %v83_v52 = vshll.u32 %v1824_v51, %v77_v45  ;;  %v86_v56 = vshll.u32 %v1825_v54, %v77_v45 }
  0xb8   :  { %v89_v59 = vshll.u32 %v1826_v57, %v77_v45  ;;  %v92_v62 = vshll.u32 %v1827_v60, %v77_v45  ;;  %vm95_vm1 = vcmp.lt.s32.totalorder %v76_v48, 1  ;;  %vm98_vm2 = vcmp.lt.s32.totalorder %v76_v48, 4 }
  0xb9   :  { %v81_v53 = vshrl.u32 %v1824_v51, %v78_v47  ;;  %v84_v55 = vshrl.u32 %v1825_v54, %v78_v47  ;;  %v87_v58 = vshrl.u32 %v1826_v57, %v78_v47  ;;  %v90_v61 = vshrl.u32 %v1827_v60, %v78_v47 }
  0xba   :  { %v93_v1 = vshrl.u32 %v1828_v63, %v78_v47  ;;  %v79_v11 = vshrl.u32 %v1823_v49, %v78_v47  ;;  %vm97_vm3 = vcmp.lt.s32.totalorder %v76_v48, 3  ;;  %vm96_vm4 = vcmp.lt.s32.totalorder %v76_v48, 2 }
  0xbb   :  { %v82_v3 = vor.u32 %v81_v53, %v80_v50  ;;  %v85_v4 = vor.u32 %v84_v55, %v83_v52  ;;  %v88_v5 = vor.u32 %v87_v58, %v86_v56  ;;  %v91_v6 = vor.u32 %v90_v61, %v89_v59 }
  0xbc   :  { %v94_v7 = vor.u32 %v93_v1, %v92_v62 }
  0xbd   :  { %v100_v8 = vsel %vm98_vm2, %v88_v5, 2102212464  ;;  %v103_v9 = vsel %vm95_vm1, %v82_v3, %v85_v4  ;;  %v107_v10 = vsel %vm95_vm1, %v85_v4, %v88_v5  ;;  %v104_v12 = vsel %vm98_vm2, %v91_v6, 920167782 }
  0xbe   :  { %v108_v13 = vsel %vm98_vm2, %v94_v7, 1326507024  ;;  %v105_v14 = vsel %vm97_vm3, %v88_v5, %v104_v12  ;;  %v99_v17 = vsel %vm95_vm1, %v79_v11, %v82_v3  ;;  %v101_v18 = vsel %vm97_vm3, %v85_v4, %v100_v8  ;;  %v1580_v3 = vld [vmem:[#allocation2] ss:$16 sps:$4 sm:$0xff]   ;;  %v1583_v4 = vld [vmem:[#allocation2 + $0x8] ss:$16 sps:$4 sm:$0xff]  }
  0xbf   :  { %v109_v15 = vsel %vm97_vm3, %v91_v6, %v108_v13  ;;  %v106_v19 = vsel %vm96_vm4, %v103_v9, %v105_v14  ;;  %v102_v25 = vsel %vm96_vm4, %v99_v17, %v101_v18  ;;  %v1588_v7 = vld [vmem:[#allocation2 + $0x24] ss:$16 sps:$4 sm:$0xff]   ;;  %v1591_v8 = vld [vmem:[#allocation2 + $0x2c] ss:$16 sps:$4 sm:$0xff]   ;;  %v1586_v9 = vld [vmem:[#allocation2 + $0x20] ss:$16 sps:$4 sm:$0xff]  }
  0xc0   :  { %v110_v20 = vsel %vm96_vm4, %v107_v10, %v109_v15  ;;  %v1897_v23 = vmul.u32.u64.low %v111_v16, %v106_v19  ;;  %v1898_v24 = vmul.u32.u64.high %v111_v16, %v106_v19, %v1897_v23  ;;  %v118_v27 = vmul.u32 %v111_v16, %v102_v25  ;;  %v1589_v10 = vld [vmem:[#allocation2 + $0x28] ss:$16 sps:$4 sm:$0xff]   ;;  %v1594_v11 = vld [vmem:[#allocation2 + $0x44] ss:$16 sps:$4 sm:$0xff]   ;;  %v1597_v12 = vld [vmem:[#allocation2 + $0x4c] ss:$16 sps:$4 sm:$0xff]  }
  0xc1   :  { %v1894_v21 = vmul.u32.u64.low %v111_v16, %v110_v20  ;;  %v1895_v22 = vmul.u32.u64.high %v111_v16, %v110_v20, %v1894_v21  ;;  %v1592_v13 = vld [vmem:[#allocation2 + $0x40] ss:$16 sps:$4 sm:$0xff]   ;;  %v1595_v14 = vld [vmem:[#allocation2 + $0x48] ss:$16 sps:$4 sm:$0xff]   ;;  %v1600_v15 = vld [vmem:[#allocation2 + $0x64] ss:$16 sps:$4 sm:$0xff]  }
  0xc2   :  { %v121_v26 = vadd.s32 1, %v1898_v24  ;;  %v1603_v16 = vld [vmem:[#allocation2 + $0x6c] ss:$16 sps:$4 sm:$0xff]   ;;  %v1598_v17 = vld [vmem:[#allocation2 + $0x60] ss:$16 sps:$4 sm:$0xff]  }
  0xc3   :  { %vm120_vm5 = vc.u32 %v1895_v22, %v1897_v23  ;;  %v119_v40 = vadd.s32 %v1897_v23, %v1895_v22  ;;  %v1601_v18 = vld [vmem:[#allocation2 + $0x68] ss:$16 sps:$4 sm:$0xff]   ;;  %v1606_v19 = vld [vmem:[#allocation2 + $0x84] ss:$16 sps:$4 sm:$0xff]   ;;  %v1609_v20 = vld [vmem:[#allocation2 + $0x8c] ss:$16 sps:$4 sm:$0xff]  }
  0xc4   :  { %v122_v28 = vsel %vm120_vm5, %v121_v26, %v1898_v24  ;;  %v1607_v22 = vld [vmem:[#allocation2 + $0x88] ss:$16 sps:$4 sm:$0xff]   ;;  %v1612_v23 = vld [vmem:[#allocation2 + $0xa4] ss:$16 sps:$4 sm:$0xff]   ;;  %v1615_v24 = vld [vmem:[#allocation2 + $0xac] ss:$16 sps:$4 sm:$0xff]  }
  0xc5   :  { %v123_v29 = vadd.s32 %v122_v28, %v118_v27  ;;  %v1610_v26 = vld [vmem:[#allocation2 + $0xa0] ss:$16 sps:$4 sm:$0xff]   ;;  %v1613_v27 = vld [vmem:[#allocation2 + $0xa8] ss:$16 sps:$4 sm:$0xff]   ;;  %v1618_v28 = vld [vmem:[#allocation2 + $0xc4] ss:$16 sps:$4 sm:$0xff]  }
  0xc7   :  { %v124_v30 = vadd.s32 536870912, %v123_v29 }
  0xc9   :  { %v125_v31 = vshrl.u32 %v124_v30, 30 }
  0xcb   :  { %v126_v32 = vshll.u32 %v125_v31, 30  ;;  %v149_v55 = vsub.s32 4, %v125_v31 }
  0xcd   :  { %v127_v33 = vsub.s32 %v123_v29, %v126_v32  ;;  %v150_v57 = vsel %vm65_vm7, %v149_v55, %v125_v31  ;;  %v1621_v29 = vld [vmem:[#allocation2 + $0xcc] ss:$16 sps:$4 sm:$0xff]   ;;  %v1616_v32 = vld [vmem:[#allocation2 + $0xc0] ss:$16 sps:$4 sm:$0xff]  }
  0xce   :  { %v152_v58 = vsel %vm64_vm8, 0, %v150_v57  ;;  %v1651_v55 = vld [vmem:[#allocation5 + $0x134] ss:$8 sps:$4 sm:$0xff]   ;;  %v1649_v57 = vld [vmem:[#allocation5 + $0x130] ss:$8 sps:$4 sm:$0xff]  }
  0xcf   :  { %v129_v34 = vsub.s32 0, %v127_v33  ;;  %v261_v59 = vand.u32 3, %v152_v58  ;;  %v156_v21 = vadd.s32 3, %v152_v58  ;;  %v1654_v58 = vld [vmem:[#allocation5 + $0x44] ss:$8 sps:$4 sm:$0xff]  }
  0xd1   :  { %v1374_v35 = vmin.u32 %v129_v34, %v127_v33  ;;  %vm266_vm9 = vcmp.eq.s32.totalorder %v261_v59, 2  ;;  %vm263_vm10 = vcmp.eq.s32.totalorder %v261_v59, 0  ;;  %vm262_vm11 = vcmp.lt.s32.totalorder %v261_v59, 2  ;;  %v1624_v34 = vld [vmem:[#allocation2 + $0xe4] ss:$16 sps:$4 sm:$0xff]  }
  0xd2   :  { %v157_v25 = vand.u32 3, %v156_v21  ;;  %v1657_v59 = vld [vmem:[#allocation5 + $0x144] ss:$8 sps:$4 sm:$0xff]   ;;  %v1691_v21 = vld [vmem:[#allocation5 + $0x1a0] ss:$8 sps:$4 sm:$0xff]  }
  0xd3   :  { %v131_v36 = vclz %v1374_v35  ;;  %v1627_v35 = vld [vmem:[#allocation2 + $0xec] ss:$16 sps:$4 sm:$0xff]  }
  0xd4   :  { %vm159_vm13 = vcmp.eq.s32.totalorder %v157_v25, 0  ;;  %vm162_vm14 = vcmp.eq.s32.totalorder %v157_v25, 2  ;;  %vm158_vm15 = vcmp.lt.s32.totalorder %v157_v25, 2  ;;  %v1702_v25 = vld [vmem:[#allocation5 + $0xc4] ss:$8 sps:$4 sm:$0xff]  }
  0xd5   :  { %v1375_v37 = vadd.s32 4294967294, %v131_v36 }
  0xd7   :  { %vm1376_vm6 = vcmp.lt.s32.totalorder %v1375_v37, 0 }
  0xd8   :  { %v134_v39 = vsel %vm1376_vm6, 0, %v1375_v37  ;;  %v1622_v37 = vld [vmem:[#allocation2 + $0xe0] ss:$16 sps:$4 sm:$0xff]  }
  0xd9   :  { %v135_v41 = vsub.s32 32, %v134_v39  ;;  %v139_v42 = vsub.s32 4294967266, %v134_v39  ;;  %v136_v44 = vshll.u32 %v127_v33, %v134_v39  ;;  %v1619_v33 = vld [vmem:[#allocation2 + $0xc8] ss:$16 sps:$4 sm:$0xff]  }
  0xda   :  { %v1625_v39 = vld [vmem:[#allocation2 + $0xe8] ss:$16 sps:$4 sm:$0xff]  }
  0xdb   :  { %v137_v45 = vshrl.u32 %v119_v40, %v135_v41  ;;  %v140_v46 = vadd.s32 127, %v139_v42  ;;  %v1628_v42 = vld [vmem:[#allocation5] ss:$8 sps:$4 sm:$0xff]  }
  0xdd   :  { %v138_v47 = vor.u32 %v137_v45, %v136_v44  ;;  %v141_v48 = vshll.u32 %v140_v46, 23  ;;  %v1630_v44 = vld [vmem:[#allocation5 + $0x4] ss:$8 sps:$4 sm:$0xff]   ;;  %v1631_v45 = vld [vmem:[#allocation5 + $0x100] ss:$8 sps:$4 sm:$0xff]  }
  0xde   :  { %v1633_v46 = vld [vmem:[#allocation5 + $0x104] ss:$8 sps:$4 sm:$0xff]  }
  0xdf   :  { %v142_v49 = vor.u32 4788187, %v141_v48  ;;  %v145_v51 = vcvt.s32.f32 %v138_v47  ;;  %v1636_v47 = vld [vmem:[#allocation5 + $0x14] ss:$8 sps:$4 sm:$0xff]  }
  0xe0   :  { %v1639_v48 = vld [vmem:[#allocation5 + $0x114] ss:$8 sps:$4 sm:$0xff]  }
  0xe1   :  { %v143_v50 = vand.u32 2147483647, %v142_v49  ;;  %v1634_v49 = vld [vmem:[#allocation5 + $0x10] ss:$8 sps:$4 sm:$0xff]  }
  0xe3   :  { %v146_v52 = vmul.f32 %v145_v51, %v143_v50  ;;  %v1637_v50 = vld [vmem:[#allocation5 + $0x110] ss:$8 sps:$4 sm:$0xff]   ;;  %v1645_v51 = vld [vmem:[#allocation5 + $0x124] ss:$8 sps:$4 sm:$0xff]  }
  0xe5   :  { %v147_v53 = vxor.u32 2147483648, %v146_v52 }
  0xe7   :  { %v148_v54 = vsel %vm65_vm7, %v147_v53, %v146_v52  ;;  %v1640_v52 = vld [vmem:[#allocation5 + $0x20] ss:$8 sps:$4 sm:$0xff]  }
  0xe8   :  { %v151_v56 = vsel %vm64_vm8, %v1888_v38, %v148_v54  ;;  %v1642_v38 = vld [vmem:[#allocation5 + $0x24] ss:$8 sps:$4 sm:$0xff]   ;;  %v1643_v53 = vld [vmem:[#allocation5 + $0x120] ss:$8 sps:$4 sm:$0xff]   ;;  %v1648_v54 = vld [vmem:[#allocation5 + $0x34] ss:$8 sps:$4 sm:$0xff]  }
  0xe9   :  { %1724 = vcosq.f32 %v151_v56 }
  0xea   :  { %1726 = vsinq.f32 %v151_v56  ;;  %v1646_v56 = vld [vmem:[#allocation5 + $0x30] ss:$8 sps:$4 sm:$0xff]  }
  0xf3   :  { %v1908_v60 = vpop.eup %1724 }
  0xf4   :  { %v1910_v61 = vpop.eup %1726  ;;  %v163_v62 = vxor.u32 2147483648, %v1908_v60 }
  0xf5   :  { %v160_v63 = vxor.u32 2147483648, %v1910_v61 }
  0xf6   :  { %v268_v43 = vsel %vm266_vm9, %v163_v62, %v1910_v61  ;;  %v164_v31 = vsel %vm162_vm14, %v163_v62, %v1910_v61  ;;  %v1655_v61 = vld [vmem:[#allocation5 + $0x140] ss:$8 sps:$4 sm:$0xff]   ;;  %v1660_v62 = vld [vmem:[#allocation5 + $0x54] ss:$8 sps:$4 sm:$0xff]  }
  0xf7   :  { %v265_v1 = vsel %vm263_vm10, %v1908_v60, %v160_v63  ;;  %v161_v30 = vsel %vm159_vm13, %v1908_v60, %v160_v63  ;;  %v1652_v60 = vld [vmem:[#allocation5 + $0x40] ss:$8 sps:$4 sm:$0xff]   ;;  %v1663_v63 = vld [vmem:[#allocation5 + $0x154] ss:$8 sps:$4 sm:$0xff]  }
  0xf8   :  { %v269_v2 = vsel %vm262_vm11, %v265_v1, %v268_v43  ;;  %v165_v36 = vsel %vm158_vm15, %v161_v30, %v164_v31  ;;  %v1658_v43 = vld [vmem:[#allocation5 + $0x50] ss:$8 sps:$4 sm:$0xff]   ;;  %v1711_v30 = vld [vmem:[#allocation5 + $0x1d4] ss:$8 sps:$4 sm:$0xff]  }
  0xf9   :  { %v270_v5 = vsel %vm155_vm12, nan, %v269_v2  ;;  %v166_v40 = vsel %vm155_vm12, nan, %v165_v36  ;;  %v1661_v1 = vld [vmem:[#allocation5 + $0x150] ss:$8 sps:$4 sm:$0xff]   ;;  %v1666_v2 = vld [vmem:[#allocation5 + $0x64] ss:$8 sps:$4 sm:$0xff]  }
  0xfa   :  { %v271_v6 = vpack.c.bf16 %v270_v5, %v270_v5  ;;  %v167_v41 = vpack.c.bf16 %v166_v40, %v166_v40  ;;  %v1667_v5 = vld [vmem:[#allocation5 + $0x160] ss:$8 sps:$4 sm:$0xff]   ;;  %v1706_v31 = vld [vmem:[#allocation5 + $0xd0] ss:$8 sps:$4 sm:$0xff]  }
  0xfb   :  { %v1715_v36 = vld [vmem:[#allocation5 + $0x1e0] ss:$8 sps:$4 sm:$0xff]   ;;  %v1718_v40 = vld [vmem:[#allocation5 + $0xf0] ss:$8 sps:$4 sm:$0xff]  }
  0xfc   :  { %529 = vmatmul.mubr.bf16.vlgmr.msra.gmra.mrb[0].mxu0 %v271_v6  ;;  %570 = vmatmul.mubr.bf16.vlgmr.msra.gmra.mrb[0].mxu1 %v271_v6  ;;  %v1672_v6 = vld [vmem:[#allocation5 + $0x74] ss:$8 sps:$4 sm:$0xff]  }
  0xfd   :  { %739 = vmatpush1.bf16.msra.mxu0 %v1580_v3  ;;  %780 = vmatpush1.bf16.msra.mxu1 %v1583_v4  ;;  %v1669_v3 = vld [vmem:[#allocation5 + $0x164] ss:$8 sps:$4 sm:$0xff]   ;;  %v1664_v4 = vld [vmem:[#allocation5 + $0x60] ss:$8 sps:$4 sm:$0xff]  }
  0xfe   :  { %740 = vmatprep.subr.bf16.mxu0 %v1588_v7  ;;  %781 = vmatprep.subr.bf16.mxu1 %v1591_v8  ;;  %v1675_v7 = vld [vmem:[#allocation5 + $0x174] ss:$8 sps:$4 sm:$0xff]   ;;  %v1670_v8 = vld [vmem:[#allocation5 + $0x70] ss:$8 sps:$4 sm:$0xff]  }
  0xff   :  { %770 = vmatprep.mubr.bf16.mxu0 %v1822_v0  ;;  %811 = vmatprep.mubr.bf16.mxu1 %v1822_v0  ;;  %v1604_v0 = vld [vmem:[#allocation2 + $0x80] ss:$16 sps:$4 sm:$0xff]  }
 0x101   :  { %741 = vmatpush1.bf16.msra.mxu0 %v1586_v9  ;;  %782 = vmatpush1.bf16.msra.mxu1 %v1589_v10  ;;  %v1673_v9 = vld [vmem:[#allocation5 + $0x170] ss:$8 sps:$4 sm:$0xff]   ;;  %v1678_v10 = vld [vmem:[#allocation5 + $0x84] ss:$8 sps:$4 sm:$0xff]  }
 0x102   :  { %742 = vmatprep.subr.bf16.mxu0 %v1594_v11  ;;  %783 = vmatprep.subr.bf16.mxu1 %v1597_v12  ;;  %v1681_v11 = vld [vmem:[#allocation5 + $0x184] ss:$8 sps:$4 sm:$0xff]   ;;  %v1676_v12 = vld [vmem:[#allocation5 + $0x80] ss:$8 sps:$4 sm:$0xff]  }
 0x105   :  { %743 = vmatpush1.bf16.msra.mxu0 %v1592_v13  ;;  %784 = vmatpush1.bf16.msra.mxu1 %v1595_v14  ;;  %v1679_v13 = vld [vmem:[#allocation5 + $0x180] ss:$8 sps:$4 sm:$0xff]   ;;  %v1684_v14 = vld [vmem:[#allocation5 + $0x94] ss:$8 sps:$4 sm:$0xff]  }
 0x106   :  { %744 = vmatprep.subr.bf16.mxu0 %v1600_v15  ;;  %785 = vmatprep.subr.bf16.mxu1 %v1603_v16  ;;  %v1687_v15 = vld [vmem:[#allocation5 + $0x194] ss:$8 sps:$4 sm:$0xff]   ;;  %v1682_v16 = vld [vmem:[#allocation5 + $0x90] ss:$8 sps:$4 sm:$0xff]  }
 0x109   :  { %745 = vmatpush1.bf16.msra.mxu0 %v1598_v17  ;;  %786 = vmatpush1.bf16.msra.mxu1 %v1601_v18  ;;  %v1685_v17 = vld [vmem:[#allocation5 + $0x190] ss:$8 sps:$4 sm:$0xff]   ;;  %v1690_v18 = vld [vmem:[#allocation5 + $0xa4] ss:$8 sps:$4 sm:$0xff]  }
 0x10a   :  { %746 = vmatprep.subr.bf16.mxu0 %v1606_v19  ;;  %787 = vmatprep.subr.bf16.mxu1 %v1609_v20  ;;  %v1693_v19 = vld [vmem:[#allocation5 + $0x1a4] ss:$8 sps:$4 sm:$0xff]   ;;  %v1688_v20 = vld [vmem:[#allocation5 + $0xa0] ss:$8 sps:$4 sm:$0xff]  }
 0x10d   :  { %747 = vmatpush1.bf16.msra.mxu0 %v1604_v0  ;;  %788 = vmatpush1.bf16.msra.mxu1 %v1607_v22  ;;  %v1696_v0 = vld [vmem:[#allocation5 + $0xb4] ss:$8 sps:$4 sm:$0xff]  }
 0x10e   :  { %748 = vmatprep.subr.bf16.mxu0 %v1612_v23  ;;  %789 = vmatprep.subr.bf16.mxu1 %v1615_v24  ;;  %v1699_v22 = vld [vmem:[#allocation5 + $0x1b4] ss:$8 sps:$4 sm:$0xff]   ;;  %v1694_v23 = vld [vmem:[#allocation5 + $0xb0] ss:$8 sps:$4 sm:$0xff]  }
 0x10f   :  { %v1697_v24 = vld [vmem:[#allocation5 + $0x1b0] ss:$8 sps:$4 sm:$0xff]  }
 0x111   :  { %749 = vmatpush1.bf16.msra.mxu0 %v1610_v26  ;;  %790 = vmatpush1.bf16.msra.mxu1 %v1613_v27  ;;  %v1705_v26 = vld [vmem:[#allocation5 + $0x1c4] ss:$8 sps:$4 sm:$0xff]   ;;  %v1700_v27 = vld [vmem:[#allocation5 + $0xc0] ss:$8 sps:$4 sm:$0xff]  }
 0x112   :  { %750 = vmatprep.subr.bf16.mxu0 %v1618_v28  ;;  %791 = vmatprep.subr.bf16.mxu1 %v1621_v29  ;;  %v1703_v28 = vld [vmem:[#allocation5 + $0x1c0] ss:$8 sps:$4 sm:$0xff]   ;;  %v1708_v29 = vld [vmem:[#allocation5 + $0xd4] ss:$8 sps:$4 sm:$0xff]  }
 0x115   :  { %751 = vmatpush1.bf16.msra.mxu0 %v1616_v32  ;;  %792 = vmatpush1.bf16.msra.mxu1 %v1619_v33  ;;  %v1709_v32 = vld [vmem:[#allocation5 + $0x1d0] ss:$8 sps:$4 sm:$0xff]   ;;  %v1714_v33 = vld [vmem:[#allocation5 + $0xe4] ss:$8 sps:$4 sm:$0xff]  }
 0x116   :  { %752 = vmatprep.subr.bf16.mxu0 %v1624_v34  ;;  %793 = vmatprep.subr.bf16.mxu1 %v1627_v35  ;;  %v1717_v34 = vld [vmem:[#allocation5 + $0x1e4] ss:$8 sps:$4 sm:$0xff]   ;;  %v1712_v35 = vld [vmem:[#allocation5 + $0xe0] ss:$8 sps:$4 sm:$0xff]  }
 0x119   :  { %753 = vmatpush1.bf16.msra.mxu0 %v1622_v37  ;;  %794 = vmatpush1.bf16.msra.mxu1 %v1625_v39  ;;  %v1720_v37 = vld [vmem:[#allocation5 + $0xf4] ss:$8 sps:$4 sm:$0xff]  }
 0x11a   :  { %1272 = vmatprep.subr.bf16.mxu1 %v1630_v44  ;;  %1313 = vmatprep.subr.bf16.mxu0 %v1633_v46  ;;  %v1723_v39 = vld [vmem:[#allocation5 + $0x1f4] ss:$8 sps:$4 sm:$0xff]  }
 0x11c   :  { %771 = vmatmul.mubr.bf16.vlgmr.msra.gmra.mrb[4].mxu0 %v167_v41  ;;  %812 = vmatmul.mubr.bf16.vlgmr.msra.gmra.mrb[4].mxu1 %v167_v41  ;;  %v1721_v41 = vld [vmem:[#allocation5 + $0x1f0] ss:$8 sps:$4 sm:$0xff]  }
 0x11d   :  { %1273 = vmatpush1.bf16.msra.mxu1 %v1628_v42  ;;  %1314 = vmatpush1.bf16.msra.mxu0 %v1631_v45 }
 0x11e   :  { %1274 = vmatprep.subr.bf16.mxu1 %v1636_v47  ;;  %1315 = vmatprep.subr.bf16.mxu0 %v1639_v48 }
 0x121   :  { %1275 = vmatpush1.bf16.msra.mxu1 %v1634_v49  ;;  %1316 = vmatpush1.bf16.msra.mxu0 %v1637_v50 }
 0x122   :  { %1276 = vmatprep.subr.bf16.mxu1 %v1642_v38  ;;  %1317 = vmatprep.subr.bf16.mxu0 %v1645_v51  ;;  %v821_v38 = vlaneseq }
 0x124   :  { %v1933_v51 = vshrl.u32 %v821_v38, 7 }
 0x125   :  { %1277 = vmatpush1.bf16.msra.mxu1 %v1640_v52  ;;  %1318 = vmatpush1.bf16.msra.mxu0 %v1643_v53 }
 0x126   :  { %1278 = vmatprep.subr.bf16.mxu1 %v1648_v54  ;;  %1319 = vmatprep.subr.bf16.mxu0 %v1651_v55  ;;  %v823_v52 = vsub.s32 0, %v1933_v51  ;;  %v831_v53 = vsub.s32 2, %v1933_v51  ;;  %v49_v54 = vld [vmem:[%s1966_s1 + $0x1] sm:$0xf]  ;;  %v827_v55 = vsub.s32 1, %v1933_v51 }
 0x129   :  { %1279 = vmatpush1.bf16.msra.mxu1 %v1646_v56  ;;  %1320 = vmatpush1.bf16.msra.mxu0 %v1649_v57  ;;  %v835_v56 = vsub.s32 3, %v1933_v51  ;;  %v824_v57 = vrot.slane %v49_v54, %v823_v52 }
 0x12a   :  { %1280 = vmatprep.subr.bf16.mxu1 %v1654_v58  ;;  %1321 = vmatprep.subr.bf16.mxu0 %v1657_v59  ;;  %v832_v58 = vrot.slane %v49_v54, %v831_v53 }
 0x12d   :  { %1281 = vmatpush1.bf16.msra.mxu1 %v1652_v60  ;;  %1322 = vmatpush1.bf16.msra.mxu0 %v1655_v61  ;;  %v828_v61 = vrot.slane %v49_v54, %v827_v55 }
 0x12e   :  { %1282 = vmatprep.subr.bf16.mxu1 %v1660_v62  ;;  %1323 = vmatprep.subr.bf16.mxu0 %v1663_v63  ;;  %v836_v62 = vrot.slane %v49_v54, %v835_v56 }
 0x131   :  { %1283 = vmatpush1.bf16.msra.mxu1 %v1658_v43  ;;  %1324 = vmatpush1.bf16.msra.mxu0 %v1661_v1 }
 0x132   :  { %1284 = vmatprep.subr.bf16.mxu1 %v1666_v2  ;;  %1325 = vmatprep.subr.bf16.mxu0 %v1669_v3 }
 0x135   :  { %1285 = vmatpush1.bf16.msra.mxu1 %v1664_v4  ;;  %1326 = vmatpush1.bf16.msra.mxu0 %v1667_v5 }
 0x136   :  { %1286 = vmatprep.subr.bf16.mxu1 %v1672_v6  ;;  %1327 = vmatprep.subr.bf16.mxu0 %v1675_v7 }
 0x139   :  { %1287 = vmatpush1.bf16.msra.mxu1 %v1670_v8  ;;  %1328 = vmatpush1.bf16.msra.mxu0 %v1673_v9 }
 0x13a   :  { %1288 = vmatprep.subr.bf16.mxu1 %v1678_v10  ;;  %1329 = vmatprep.subr.bf16.mxu0 %v1681_v11 }
 0x13d   :  { %1289 = vmatpush1.bf16.msra.mxu1 %v1676_v12  ;;  %1330 = vmatpush1.bf16.msra.mxu0 %v1679_v13 }
 0x13e   :  { %1290 = vmatprep.subr.bf16.mxu1 %v1684_v14  ;;  %1331 = vmatprep.subr.bf16.mxu0 %v1687_v15 }
 0x141   :  { %1291 = vmatpush1.bf16.msra.mxu1 %v1682_v16  ;;  %1332 = vmatpush1.bf16.msra.mxu0 %v1685_v17 }
 0x142   :  { %1292 = vmatprep.subr.bf16.mxu1 %v1690_v18  ;;  %1333 = vmatprep.subr.bf16.mxu0 %v1693_v19 }
 0x145   :  { %1293 = vmatpush1.bf16.msra.mxu1 %v1688_v20  ;;  %1334 = vmatpush1.bf16.msra.mxu0 %v1691_v21 }
 0x146   :  { %1294 = vmatprep.subr.bf16.mxu1 %v1696_v0  ;;  %1335 = vmatprep.subr.bf16.mxu0 %v1699_v22 }
 0x149   :  { %1295 = vmatpush1.bf16.msra.mxu1 %v1694_v23  ;;  %1336 = vmatpush1.bf16.msra.mxu0 %v1697_v24 }
 0x14a   :  { %1296 = vmatprep.subr.bf16.mxu1 %v1702_v25  ;;  %1337 = vmatprep.subr.bf16.mxu0 %v1705_v26 }
 0x14d   :  { %1297 = vmatpush1.bf16.msra.mxu1 %v1700_v27  ;;  %1338 = vmatpush1.bf16.msra.mxu0 %v1703_v28 }
 0x14e   :  { %1298 = vmatprep.subr.bf16.mxu1 %v1708_v29  ;;  %1339 = vmatprep.subr.bf16.mxu0 %v1711_v30 }
 0x151   :  { %1299 = vmatpush1.bf16.msra.mxu1 %v1706_v31  ;;  %1340 = vmatpush1.bf16.msra.mxu0 %v1709_v32 }
 0x152   :  { %1300 = vmatprep.subr.bf16.mxu1 %v1714_v33  ;;  %1341 = vmatprep.subr.bf16.mxu0 %v1717_v34 }
 0x155   :  { %1301 = vmatpush1.bf16.msra.mxu1 %v1712_v35  ;;  %1342 = vmatpush1.bf16.msra.mxu0 %v1715_v36 }
 0x156   :  { %1302 = vmatprep.subr.bf16.mxu1 %v1720_v37  ;;  %1343 = vmatprep.subr.bf16.mxu0 %v1723_v39 }
 0x159   :  { %1303 = vmatpush1.bf16.msra.mxu1 %v1718_v40  ;;  %1344 = vmatpush1.bf16.msra.mxu0 %v1721_v41  ;;  %v50_v41 = vld [vmem:[%s1966_s1 + $0x5] sm:$0x3]  ;;  %s1788_s1 = scalar_lea.vmem %s1363_s23, 256 }
 0x15a   :  { %p1789_p2 = scmp.ne.s32.totalorder %s1363_s23, %s1788_s1  ;;  %p1794_p4 = scmp.lt.s32.totalorder %s1788_s1, %s1788_s1 }
 0x15c   :  { %p1795_p5 = por %p1794_p4, %p1793_p3 }
 0x15e   :  { %p1796_p6 = pnand %p1795_p5, %p1789_p2 }
 0x1cf   :  { %v530_v42 = vpop.f32.mrb[0].mxu0  ;;  %v571_v44 = vpop.f32.mrb[0].mxu1 }
 0x1d0   :  { %v532_v45 = vpop.f32.mrb[1].mxu0  ;;  %v573_v46 = vpop.f32.mrb[1].mxu1 }
 0x1d1   :  { %v534_v47 = vpop.f32.mrb[2].mxu0  ;;  %v575_v48 = vpop.f32.mrb[2].mxu1 }
 0x1d2   :  { %v535_v49 = vpop.f32.mrb[3].mxu0  ;;  %v576_v50 = vpop.f32.mrb[3].mxu1 }
 0x1ef   :  { %v772_v59 = vpop.f32.mrb[4].mxu0  ;;  %v813_v60 = vpop.f32.mrb[4].mxu1 }
 0x1f0   :  { %v773_v63 = vadd.f32 %v772_v59, %v530_v42  ;;  %v814_v43 = vadd.f32 %v813_v60, %v571_v44  ;;  %v774_v1 = vpop.f32.mrb[5].mxu0  ;;  %v815_v2 = vpop.f32.mrb[5].mxu1  ;;  %v945_v42 = vrot.slane %v50_v41, %v823_v52  ;;  %v949_v44 = vrot.slane %v50_v41, %v827_v55 }
 0x1f1   :  { %v775_v3 = vadd.f32 %v774_v1, %v532_v45  ;;  %v816_v4 = vadd.f32 %v815_v2, %v573_v46  ;;  %v776_v5 = vpop.f32.mrb[6].mxu0  ;;  %v817_v6 = vpop.f32.mrb[6].mxu1 }
 0x1f2   :  { %v841_v7 = vadd.f32 %v824_v57, %v773_v63  ;;  %v843_v8 = vadd.f32 %v832_v58, %v814_v43  ;;  %v777_v9 = vpop.f32.mrb[7].mxu0  ;;  %v818_v10 = vpop.f32.mrb[7].mxu1 }
 0x1f3   :  { %v842_v11 = vadd.f32 %v828_v61, %v775_v3  ;;  %v844_v12 = vadd.f32 %v836_v62, %v816_v4 }
 0x1f4   :  { %v845_v13 = vsub.f32 0.0, %v841_v7  ;;  %v847_v14 = vsub.f32 0.0, %v843_v8 }
 0x1f5   :  { %v846_v15 = vsub.f32 0.0, %v842_v11  ;;  %v848_v16 = vsub.f32 0.0, %v844_v12 }
 0x1f6   :  { %v849_v17 = vmul.f32 1.442695, %v845_v13  ;;  %v853_v18 = vmul.f32 1.442695, %v847_v14 }
 0x1f7   :  { %v851_v19 = vmul.f32 1.442695, %v846_v15  ;;  %v855_v20 = vmul.f32 1.442695, %v848_v16 }
 0x1f8   :  { %1728 = vpow2.f32 %v849_v17 }
 0x1f9   :  { %1730 = vpow2.f32 %v853_v18 }
 0x1fa   :  { %1732 = vpow2.f32 %v851_v19 }
 0x1fb   :  { %1734 = vpow2.f32 %v855_v20 }
 0x202   :  { %v1729_v21 = vpop.eup %1728 }
 0x203   :  { %v1731_v0 = vpop.eup %1730  ;;  %v857_v22 = vadd.f32 1.0, %v1729_v21 }
 0x204   :  { %v1733_v23 = vpop.eup %1732  ;;  %v859_v24 = vadd.f32 1.0, %v1731_v0 }
 0x205   :  { %v1735_v25 = vpop.eup %1734  ;;  %1736 = vrcp.f32 %v857_v22  ;;  %v858_v26 = vadd.f32 1.0, %v1733_v23 }
 0x206   :  { %1738 = vrcp.f32 %v859_v24  ;;  %v860_v27 = vadd.f32 1.0, %v1735_v25 }
 0x207   :  { %1740 = vrcp.f32 %v858_v26 }
 0x208   :  { %1742 = vrcp.f32 %v860_v27 }
 0x20f   :  { %v1737_v28 = vpop.eup %1736 }
 0x210   :  { %v1739_v29 = vpop.eup %1738  ;;  %v869_v31 = vmul.f32 %v1737_v28, %v841_v7 }
 0x211   :  { %v1741_v30 = vpop.eup %1740  ;;  %v871_v33 = vmul.f32 %v1739_v29, %v843_v8 }
 0x212   :  { %v1743_v32 = vpop.eup %1742  ;;  %v870_v34 = vmul.f32 %v1741_v30, %v842_v11  ;;  %v873_v37 = vpack.c.bf16 %v869_v31, %v869_v31 }
 0x213   :  { %v872_v35 = vmul.f32 %v1743_v32, %v844_v12  ;;  %v875_v40 = vpack.c.bf16 %v871_v33, %v871_v33 }
 0x214   :  { %v874_v36 = vpack.c.bf16 %v870_v34, %v870_v34 }
 0x215   :  { %v876_v39 = vpack.c.bf16 %v872_v35, %v872_v35 }
 0x216   :  { %1304 = vmatprep.mubr.bf16.mxu1 %v874_v36 }
 0x217   :  { %1345 = vmatprep.mubr.bf16.mxu0 %v876_v39  ;;  %1305 = vmatmul.mubr.bf16.vlgmr.msra.gmra.mrb[8].mxu1 %v873_v37 }
 0x218   :  { %1346 = vmatmul.mubr.bf16.vlgmr.msra.gmra.mrb[8].mxu0 %v875_v40 }
 0x2ea   :  { %v1306_v45 = vpop.f32.mrb[8].mxu1 }
 0x2eb   :  { %v1307_v46 = vadd.f32 %v1306_v45, %v945_v42  ;;  %v1347_v47 = vpop.f32.mrb[8].mxu0  ;;  %v1308_v48 = vpop.f32.mrb[9].mxu1 }
 0x2ec   :  { %v1309_v49 = vadd.f32 %v1308_v48, %v949_v44  ;;  %v1349_v50 = vpop.f32.mrb[9].mxu0  ;;  %v1310_v38 = vpop.f32.mrb[10].mxu1 }
 0x2ed   :  { %v1348_v53 = vadd.f32 %v1347_v47, %v1307_v46  ;;  %v1351_v54 = vpop.f32.mrb[10].mxu0  ;;  %v1311_v56 = vpop.f32.mrb[11].mxu1 }
 0x2ee   :  { %v1350_v57 = vadd.f32 %v1349_v50, %v1309_v49  ;;  %v1352_v58 = vpop.f32.mrb[11].mxu0 }
 0x2ef   :  { %1354 = vst [vmem:[#allocation7] sm:$0xff] %v1348_v53 }
 0x2f0   :  { %1355 = vst [vmem:[#allocation7 + $0x8] sm:$0xff] %v1350_v57 }
 0x2f1   :  { %1799 = shalt.err (!%p1796_p6)
}
 0x2f2   :  { %s1800_s26 = scalar_lea.hbm %s1969_s4, 256 }
 0x2f3   :  { %p1801_p7 = scmp.ne.s32.totalorder %s1969_s4, %s1800_s26  ;;  %p1804_p8 = scmp.lt.u32.totalorder %s1800_s26, %s1969_s4 }
 0x2f5   :  { %p1806_p9 = pnand %p1804_p8, %p1801_p7 }
 0x2f7   :  { %1809 = shalt.err (!%p1806_p9)
}
 0x2f8   :  { %1365 = dma.vmem_to_hbm [thread:$0]  %s1363_s23, 256, %s1969_s4, [#allocation4]  }
 0x2f9   :  { %1814 = dma.done.wait [#allocation4], 256  }
 0x2fa   :  { %1815 = vsyncadd [#allocation4], 4294967040 }
 0x2fb   :  { %1369 = vsyncpa [#allocation3], 1 }
 0x2fc   :  { %1370 = vsyncpa [#allocation6], 1 }
 0x2fd   :  { %1371 = vsyncpa [#allocation4], 1 }

</bundles_post_ra>
